<compile_context>
chip_gen: v6e
topology: v6e:2x2x1
jax: 0.10.0
libtpu: 0.0.40
codegen_flags: <defaults>
</compile_context>

<pallas_src>
import functools

import jax
import jax.numpy as jnp
from jax.experimental import pallas as pl
from jax.experimental.pallas import tpu as pltpu


def _circle_ce_kernel(inp_ref, lab_ref, out_ref, *, m, gamma, batch):
    i = pl.program_id(0)

    x = inp_ref[...].astype(jnp.float32)            # (TB, C)
    lab = lab_ref[...]                              # (TB, 1) int32
    tb, c = x.shape

    # One-hot mask of the label column, built from a lane iota.
    col = jax.lax.broadcasted_iota(jnp.int32, (tb, c), 1)
    is_tgt = col == lab                             # (TB, C) bool

    # Scatter-modified scale (forward value of the detached alpha) and margin.
    # Clamp hoisted outside the select (one vmax instead of two).
    alpha = jnp.maximum(jnp.where(is_tgt, 1.0 + m - x, x + m), 0.0)
    sigma = jnp.where(is_tgt, 1.0 - m, m)
    logits = alpha * (x - sigma) * gamma            # (TB, C)

    # Row-wise cross entropy: logsumexp(logits) - logits[label].
    # Single max-shifted exp pass over the tile.
    mx = jnp.max(logits, axis=1, keepdims=True)                     # (TB, 1)
    e = jnp.exp(logits - mx)
    lse = mx + jnp.log(jnp.sum(e, axis=1, keepdims=True))           # (TB, 1)
    tgt = jnp.sum(jnp.where(is_tgt, logits, 0.0), axis=1, keepdims=True)

    # Mask padded tail rows (ragged B) so they contribute exactly 0.
    row = i * tb + jax.lax.broadcasted_iota(jnp.int32, (tb, 1), 0)
    valid = row < batch
    out_ref[...] = jnp.where(valid, lse - tgt, 0.0)


def circle_loss_like_ce(inp, label, m=0.25, gamma=64.0, block_b=None):
    """inp: (B, C) logits, label: (B,) int class ids. Returns scalar mean loss."""
    B, C = inp.shape
    lab2 = label.astype(jnp.int32).reshape(B, 1)

    # --- generation-aware VMEM budget / tile sizing --------------------------
    try:
        info = pltpu.get_tpu_info()
        vmem_cap = int(getattr(info, "vmem_capacity_bytes", 64 << 20))
    except Exception:  # pragma: no cover - conservative fallback
        vmem_cap = 64 << 20
    # Explicit scoped-VMEM limit (v5e defaults to only 16 MiB); keep headroom
    # below physical capacity (64 MiB on v7x, 128 MiB on v5e/v6e).
    vmem_limit = int(min(vmem_cap * 3 // 4, 96 << 20))

    if block_b is None:
        in_bytes = inp.dtype.itemsize
        # 2 pipeline buffers of the input tile + ~6 full-tile f32 temporaries.
        per_row_bytes = C * (2 * in_bytes + 6 * 4)
        budget = vmem_limit // 2
        block_b = (budget // per_row_bytes) // 8 * 8
        block_b = max(8, min(1024, block_b))
    # Never larger than the (8-rounded) batch; always a multiple of 8.
    block_b = min(block_b, pl.cdiv(B, 8) * 8)
    block_b = max(8, (block_b // 8) * 8)

    grid = (pl.cdiv(B, block_b),)

    kernel = functools.partial(
        _circle_ce_kernel, m=float(m), gamma=float(gamma), batch=B
    )

    per_row_loss = pl.pallas_call(
        kernel,
        grid=grid,
        in_specs=[
            pl.BlockSpec((block_b, C), lambda i: (i, 0)),   # logits tile
            pl.BlockSpec((block_b, 1), lambda i: (i, 0)),   # labels tile
        ],
        out_specs=pl.BlockSpec((block_b, 1), lambda i: (i, 0)),
        out_shape=jax.ShapeDtypeStruct((B, 1), jnp.float32),
        compiler_params=pltpu.CompilerParams(
            dimension_semantics=("parallel",),   # each tile independent -> megacore on v7x
            vmem_limit_bytes=vmem_limit,
        ),
    )(inp, lab2)

    return jnp.sum(per_row_loss) * (1.0 / B)


def _reference(inp, label, m, gamma):
    """Pure-JAX reference mirroring the PyTorch module's forward."""
    inp = inp.astype(jnp.float32)
    B, C = inp.shape
    onehot = label[:, None] == jnp.arange(C)[None, :]
    a = jnp.maximum(inp + m, 0.0)
    src = jnp.maximum(-jnp.take_along_axis(inp, label[:, None], axis=1) + 1.0 + m, 0.0)
    a = jnp.where(onehot, src, a)
    sigma = jnp.where(onehot, 1.0 - m, m)
    logits = a * (inp - sigma) * gamma
    lse = jax.scipy.special.logsumexp(logits, axis=1, keepdims=True)
    tgt = jnp.take_along_axis(logits, label[:, None], axis=1)
    return jnp.mean(lse - tgt)


if __name__ == "__main__":
    m, gamma = 0.25, 64.0
    key = jax.random.PRNGKey(0)

    # Test 1: small aligned shapes (64 samples, 128 classes, auto tile size).
    B, C = 64, 128
    ki, kl, key = jax.random.split(key, 3)
    inp = jax.random.uniform(ki, (B, C), jnp.float32, minval=-1.0, maxval=1.0)
    label = jax.random.randint(kl, (B,), 0, C, dtype=jnp.int32)

    loss = circle_loss_like_ce(inp, label, m=m, gamma=gamma)
    jax.block_until_ready(loss)
    ref = _reference(inp, label, m, gamma)
    assert jnp.allclose(loss, ref, rtol=2e-5, atol=1e-4), (loss, ref)

    # Test 2: ragged batch + unaligned class count, forced small tile so the
    # last grid step is a partial block (exercises the masking path).
    B2, C2 = 20, 100
    ki2, kl2, _ = jax.random.split(key, 3)
    inp2 = jax.random.uniform(ki2, (B2, C2), jnp.float32, minval=-1.0, maxval=1.0)
    label2 = jax.random.randint(kl2, (B2,), 0, C2, dtype=jnp.int32)

    loss2 = circle_loss_like_ce(inp2, label2, m=m, gamma=gamma, block_b=8)
    jax.block_until_ready(loss2)
    ref2 = _reference(inp2, label2, m, gamma)
    assert jnp.allclose(loss2, ref2, rtol=2e-5, atol=1e-4), (loss2, ref2)

    print("KERNEL_OK")
</pallas_src>

<mosaic_0001>
module attributes {stable_mosaic.version = 11 : i64} {
  func.func @_circle_ce_kernel(%arg0: i32, %arg1: memref<64x128xf32, #tpu.memory_space<vmem>>, %arg2: memref<64x1xi32, #tpu.memory_space<vmem>>, %arg3: memref<64x1xf32, #tpu.memory_space<vmem>>) attributes {dimension_semantics = [#tpu.dimension_semantics<parallel>], iteration_bounds = array<i64: 1>, scalar_prefetch = 0 : i64, scratch_operands = 0 : i64, tpu.core_type = #tpu.core_type<tc>, window_params = [{transform_indices = @transform_0, window_bounds = array<i64: 64, 128>}, {transform_indices = @transform_1, window_bounds = array<i64: 64, 1>}, {transform_indices = @transform_2, window_bounds = array<i64: 64, 1>}]} {
    %c0 = arith.constant 0 : index
    %c0_0 = arith.constant 0 : index
    %0 = vector.load %arg1[%c0, %c0_0] : memref<64x128xf32, #tpu.memory_space<vmem>>, vector<64x128xf32>
    %c0_1 = arith.constant 0 : index
    %c0_2 = arith.constant 0 : index
    %1 = vector.load %arg2[%c0_1, %c0_2] : memref<64x1xi32, #tpu.memory_space<vmem>>, vector<64x1xi32>
    %2 = tpu.iota {dimensions = array<i32: 1>} : vector<64x128xi32>
    %3 = vector.broadcast %1 : vector<64x1xi32> to vector<64x128xi32>
    %4 = arith.cmpi eq, %2, %3 : vector<64x128xi32>
    %cst = arith.constant 1.250000e+00 : f32
    %5 = vector.broadcast %cst : f32 to vector<64x128xf32>
    %6 = arith.subf %5, %0 : vector<64x128xf32>
    %cst_3 = arith.constant 2.500000e-01 : f32
    %7 = vector.broadcast %cst_3 : f32 to vector<64x128xf32>
    %8 = arith.addf %0, %7 : vector<64x128xf32>
    %9 = arith.select %4, %6, %8 : vector<64x128xi1>, vector<64x128xf32>
    %cst_4 = arith.constant 0.000000e+00 : f32
    %10 = vector.broadcast %cst_4 : f32 to vector<64x128xf32>
    %11 = arith.maximumf %9, %10 : vector<64x128xf32>
    %cst_5 = arith.constant 7.500000e-01 : f32
    %cst_6 = arith.constant 2.500000e-01 : f32
    %12 = vector.broadcast %cst_5 : f32 to vector<64x128xf32>
    %13 = vector.broadcast %cst_6 : f32 to vector<64x128xf32>
    %14 = arith.select %4, %12, %13 : vector<64x128xi1>, vector<64x128xf32>
    %15 = arith.subf %0, %14 : vector<64x128xf32>
    %16 = arith.mulf %11, %15 : vector<64x128xf32>
    %cst_7 = arith.constant 6.400000e+01 : f32
    %17 = vector.broadcast %cst_7 : f32 to vector<64x128xf32>
    %18 = arith.mulf %16, %17 : vector<64x128xf32>
    %cst_8 = arith.constant dense<0xFF800000> : vector<64xf32>
    %19 = vector.multi_reduction <maximumf>, %18, %cst_8 [1] : vector<64x128xf32> to vector<64xf32>
    %20 = vector.shape_cast %19 : vector<64xf32> to vector<64x1xf32>
    %21 = vector.broadcast %20 : vector<64x1xf32> to vector<64x128xf32>
    %22 = arith.subf %18, %21 : vector<64x128xf32>
    %23 = math.exp %22 : vector<64x128xf32>
    %cst_9 = arith.constant dense<0.000000e+00> : vector<64xf32>
    %24 = vector.multi_reduction <add>, %23, %cst_9 [1] : vector<64x128xf32> to vector<64xf32>
    %25 = vector.shape_cast %24 : vector<64xf32> to vector<64x1xf32>
    %26 = math.log %25 : vector<64x1xf32>
    %27 = arith.addf %20, %26 : vector<64x1xf32>
    %cst_10 = arith.constant 0.000000e+00 : f32
    %28 = vector.broadcast %cst_10 : f32 to vector<64x128xf32>
    %29 = arith.select %4, %18, %28 : vector<64x128xi1>, vector<64x128xf32>
    %cst_11 = arith.constant dense<0.000000e+00> : vector<64xf32>
    %30 = vector.multi_reduction <add>, %29, %cst_11 [1] : vector<64x128xf32> to vector<64xf32>
    %31 = vector.shape_cast %30 : vector<64xf32> to vector<64x1xf32>
    %c64_i32 = arith.constant 64 : i32
    %32 = arith.muli %arg0, %c64_i32 : i32
    %33 = tpu.iota {dimensions = array<i32: 0>} : vector<64x1xi32>
    %34 = vector.broadcast %32 : i32 to vector<64x1xi32>
    %35 = arith.addi %34, %33 : vector<64x1xi32>
    %c64_i32_12 = arith.constant 64 : i32
    %36 = vector.broadcast %c64_i32_12 : i32 to vector<64x1xi32>
    %37 = arith.cmpi slt, %35, %36 : vector<64x1xi32>
    %38 = arith.subf %27, %31 : vector<64x1xf32>
    %cst_13 = arith.constant 0.000000e+00 : f32
    %39 = vector.broadcast %cst_13 : f32 to vector<64x1xf32>
    %40 = arith.select %37, %38, %39 : vector<64x1xi1>, vector<64x1xf32>
    %c0_14 = arith.constant 0 : index
    %c0_15 = arith.constant 0 : index
    %41 = vector.load %arg3[%c0_14, %c0_15] : memref<64x1xf32, #tpu.memory_space<vmem>>, vector<64x1xf32>
    tpu.vector_store %arg3[%c0_14, %c0_15], %40 {strides = array<i32>} : memref<64x1xf32, #tpu.memory_space<vmem>>, vector<64x1xf32>,
    return
  }
  func.func @transform_0(%arg0: i32) -> (i32, i32) {
    %c0_i32 = arith.constant 0 : i32
    %c0_i32_0 = arith.constant 0 : i32
    return %arg0, %c0_i32 : i32, i32
  }
  func.func @transform_1(%arg0: i32) -> (i32, i32) {
    %c0_i32 = arith.constant 0 : i32
    %c0_i32_0 = arith.constant 0 : i32
    return %arg0, %c0_i32 : i32, i32
  }
  func.func @transform_2(%arg0: i32) -> (i32, i32) {
    %c0_i32 = arith.constant 0 : i32
    %c0_i32_0 = arith.constant 0 : i32
    return %arg0, %c0_i32 : i32, i32
  }
}

</mosaic_0001>

<bundles_post_ra>
// kernel: tpu_custom_call.1
= control target key start
LH: loop header
LB: loop body
LE: loop exit
PB: predicated region body
PF: predicated region fallthrough
CT: control target
= control target key end

     0   :  { %v321_v0 = vmov 0   ;;  %v27_v9 = vlaneseq  ;;  %v322_v28 = vmov 0.25   ;;  %vm272_vm8 = vcmask 7168   ;;  %s611_s1 = inlined_call_operand.vmem [shape: s32[64,1], index: 1, kind: input, shape index: {}]   ;;  %s612_s0 = inlined_call_operand.vmem [shape: f32[64,128], index: 0, kind: input, shape index: {}]   ;;  %s613_s2 = inlined_call_operand.vmem [shape: f32[64,1], index: 2, kind: output, shape index: {}]  }
   0x1   :  { %288 = vset.pattern.permute.xlu1 %v321_v0  ;;  %287 = vset.pattern.permute.xlu0 %v321_v0  ;;  %v21_v1 = vld [vmem:[%s611_s1 + $0x10] sm:$0xff]  ;;  %v19_v2 = vld [vmem:[%s611_s1] sm:$0xff]  ;;  %v22_v3 = vld [vmem:[%s611_s1 + $0x18] sm:$0xff] }
   0x2   :  { %36 = vperm.xlu1 %288, %v21_v1   ;;  %30 = vperm.xlu0 %287, %v19_v2   ;;  %v20_v4 = vld [vmem:[%s611_s1 + $0x8] sm:$0xff]  ;;  %v23_v6 = vld [vmem:[%s611_s1 + $0x20] sm:$0xff]  ;;  %v26_v7 = vld [vmem:[%s611_s1 + $0x38] sm:$0xff]  ;;  %v368_v12 = vand.u32 127, %v27_v9 }
   0x3   :  { %v24_v5 = vld [vmem:[%s611_s1 + $0x28] sm:$0xff]  ;;  %v25_v8 = vld [vmem:[%s611_s1 + $0x30] sm:$0xff]  ;;  %v11_v11 = vld [vmem:[%s612_s0] sm:$0xff] }
   0x4   :  { %v13_v10 = vld [vmem:[%s612_s0 + $0x10] sm:$0xff]  ;;  %v373_v13 = vld [vmem:[%s612_s0 + $0x18] sm:$0xff]  ;;  %v61_v16 = vsub.f32 1.25, %v11_v11  ;;  %v69_v17 = vadd.f32 0.25, %v11_v11  ;;  %v12_v18 = vld [vmem:[%s612_s0 + $0x8] sm:$0xff] }
   0x5   :  { %v63_v14 = vsub.f32 1.25, %v13_v10  ;;  %v71_v15 = vadd.f32 0.25, %v13_v10  ;;  %v64_v21 = vsub.f32 1.25, %v373_v13  ;;  %v72_v22 = vadd.f32 0.25, %v373_v13  ;;  %v387_v23 = vld [vmem:[%s612_s0 + $0x28] sm:$0xff]  ;;  %v15_v26 = vld [vmem:[%s612_s0 + $0x20] sm:$0xff] }
   0x6   :  { %39 = vperm.xlu1 %288, %v22_v3   ;;  %33 = vperm.xlu0 %287, %v20_v4   ;;  %v62_v24 = vsub.f32 1.25, %v12_v18  ;;  %v70_v25 = vadd.f32 0.25, %v12_v18  ;;  %v411_v32 = vld [vmem:[%s612_s0 + $0x38] sm:$0xff]  ;;  %v66_v35 = vsub.f32 1.25, %v387_v23  ;;  %v74_v36 = vadd.f32 0.25, %v387_v23  ;;  %v17_v45 = vld [vmem:[%s612_s0 + $0x30] sm:$0xff] }
   0x7   :  { %v65_v41 = vsub.f32 1.25, %v15_v26  ;;  %v73_v42 = vadd.f32 0.25, %v15_v26  ;;  %v68_v44 = vsub.f32 1.25, %v411_v32  ;;  %v76_v57 = vadd.f32 0.25, %v411_v32 }
   0x8   :  { %v67_v58 = vsub.f32 1.25, %v17_v45  ;;  %v75_v60 = vadd.f32 0.25, %v17_v45 }
   0xa   :  { %45 = vperm.xlu1 %288, %v24_v5   ;;  %42 = vperm.xlu0 %287, %v23_v6  }
   0xe   :  { %51 = vperm.xlu1 %288, %v26_v7   ;;  %48 = vperm.xlu0 %287, %v25_v8  }
  0x7d   :  { %v378_v19 = vpop.permute.xlu1 %36  ;;  %v380_v20 = vpop.permute.xlu0 %30 }
  0x7e   :  { %vm55_vm0 = vcmp.eq.s32.totalorder %v368_v12, %v378_v19  ;;  %vm53_vm1 = vcmp.eq.s32.totalorder %v368_v12, %v380_v20 }
  0x7f   :  { %v79_v27 = vsel %vm55_vm0, %v63_v14, %v71_v15  ;;  %v95_v29 = vsel %vm55_vm0, 0.75, %v322_v28  ;;  %v77_v30 = vsel %vm53_vm1, %v61_v16, %v69_v17  ;;  %v93_v31 = vsel %vm53_vm1, 0.75, %v322_v28 }
  0x80   :  { %v85_v33 = vmax.f32 %v77_v30, 0.0  ;;  %v101_v34 = vsub.f32 %v11_v11, %v93_v31  ;;  %v87_v37 = vmax.f32 %v79_v27, 0.0  ;;  %v103_v38 = vsub.f32 %v13_v10, %v95_v29 }
  0x81   :  { %v415_v39 = vpop.permute.xlu1 %39  ;;  %v417_v40 = vpop.permute.xlu0 %33 }
  0x82   :  { %vm56_vm2 = vcmp.eq.s32.totalorder %v368_v12, %v415_v39  ;;  %vm54_vm3 = vcmp.eq.s32.totalorder %v368_v12, %v417_v40  ;;  %v109_v43 = vmul.f32 %v101_v34, %v85_v33  ;;  %v111_v59 = vmul.f32 %v103_v38, %v87_v37 }
  0x83   :  { %v80_v46 = vsel %vm56_vm2, %v64_v21, %v72_v22  ;;  %v96_v47 = vsel %vm56_vm2, 0.75, %v322_v28  ;;  %v78_v48 = vsel %vm54_vm3, %v62_v24, %v70_v25  ;;  %v94_v49 = vsel %vm54_vm3, 0.75, %v322_v28 }
  0x84   :  { %v88_v50 = vmax.f32 %v80_v46, 0.0  ;;  %v104_v51 = vsub.f32 %v373_v13, %v96_v47  ;;  %v86_v52 = vmax.f32 %v78_v48, 0.0  ;;  %v102_v53 = vsub.f32 %v12_v18, %v94_v49 }
  0x85   :  { %v440_v54 = vpop.permute.xlu1 %45  ;;  %v442_v55 = vpop.permute.xlu0 %42  ;;  %v444_v56 = vmul.f32 64.0, %v109_v43  ;;  %v471_v10 = vmul.f32 64.0, %v111_v59 }
  0x86   :  { %vm58_vm4 = vcmp.eq.s32.totalorder %v368_v12, %v440_v54  ;;  %vm57_vm5 = vcmp.eq.s32.totalorder %v368_v12, %v442_v55  ;;  %v110_v61 = vmul.f32 %v102_v53, %v86_v52  ;;  %v112_v4 = vmul.f32 %v104_v51, %v88_v50 }
  0x87   :  { %v82_v62 = vsel %vm58_vm4, %v66_v35, %v74_v36  ;;  %v98_v63 = vsel %vm58_vm4, 0.75, %v322_v28  ;;  %v81_v0 = vsel %vm57_vm5, %v65_v41, %v73_v42  ;;  %v97_v1 = vsel %vm57_vm5, 0.75, %v322_v28  ;;  %125 = vmax.xlane.f32.xlu0 %v444_v56 }
  0x88   :  { %v89_v2 = vmax.f32 %v81_v0, 0.0  ;;  %v105_v3 = vsub.f32 %v15_v26, %v97_v1  ;;  %v90_v5 = vmax.f32 %v82_v62, 0.0  ;;  %v106_v6 = vsub.f32 %v387_v23, %v98_v63 }
  0x89   :  { %v465_v7 = vpop.permute.xlu1 %51  ;;  %v467_v8 = vpop.permute.xlu0 %48  ;;  %v469_v9 = vmul.f32 64.0, %v110_v61  ;;  %v491_v21 = vmul.f32 64.0, %v112_v4  ;;  %v205_v4 = vsel %vm53_vm1, %v444_v56, 0.0 }
  0x8a   :  { %vm60_vm6 = vcmp.eq.s32.totalorder %v368_v12, %v465_v7  ;;  %vm59_vm7 = vcmp.eq.s32.totalorder %v368_v12, %v467_v8  ;;  %v113_v11 = vmul.f32 %v105_v3, %v89_v2  ;;  %v114_v25 = vmul.f32 %v106_v6, %v90_v5 }
  0x8b   :  { %v84_v13 = vsel %vm60_vm6, %v68_v44, %v76_v57  ;;  %v100_v14 = vsel %vm60_vm6, 0.75, %v322_v28  ;;  %v83_v15 = vsel %vm59_vm7, %v67_v58, %v75_v60  ;;  %v99_v16 = vsel %vm59_vm7, 0.75, %v322_v28  ;;  %127 = vmax.xlane.f32.xlu1 %v469_v9  ;;  %129 = vmax.xlane.f32.xlu0 %v471_v10 }
  0x8c   :  { %v91_v17 = vmax.f32 %v83_v15, 0.0  ;;  %v107_v18 = vsub.f32 %v17_v45, %v99_v16  ;;  %v92_v22 = vmax.f32 %v84_v13, 0.0  ;;  %v108_v23 = vsub.f32 %v411_v32, %v100_v14 }
  0x8d   :  { %v494_v24 = vmul.f32 64.0, %v113_v11  ;;  %v500_v28 = vmul.f32 64.0, %v114_v25  ;;  %v206_v5 = vsel %vm54_vm3, %v469_v9, 0.0  ;;  %v207_v6 = vsel %vm55_vm0, %v471_v10, 0.0 }
  0x8e   :  { %v115_v26 = vmul.f32 %v107_v18, %v91_v17  ;;  %v116_v29 = vmul.f32 %v108_v23, %v92_v22  ;;  %v208_v20 = vsel %vm56_vm2, %v491_v21, 0.0 }
  0x8f   :  { %133 = vmax.xlane.f32.xlu1 %v494_v24  ;;  %131 = vmax.xlane.f32.xlu0 %v491_v21  ;;  %v210_v19 = vsel %vm58_vm4, %v500_v28, 0.0 }
  0x90   :  { %v498_v27 = vmul.f32 64.0, %v115_v26  ;;  %v504_v30 = vmul.f32 64.0, %v116_v29 }
  0x92   :  { %v211_v40 = vsel %vm59_vm7, %v498_v27, 0.0  ;;  %v212_v39 = vsel %vm60_vm6, %v504_v30, 0.0 }
  0x93   :  { %137 = vmax.xlane.f32.xlu1 %v498_v27  ;;  %135 = vmax.xlane.f32.xlu0 %v500_v28 }
  0x97   :  { %139 = vmax.xlane.f32.xlu0 %v504_v30 }
 0x110   :  { %v507_v31 = vpop.xlane.xlu0 %125 }
 0x111   :  { %v141_v32 = vsub.f32 %v444_v56, %v507_v31  ;;  %v209_v56 = vsel %vm57_vm5, %v494_v24, 0.0 }
 0x113   :  { %v149_v33 = vmul.f32 1.442695, %v141_v32 }
 0x114   :  { %v511_v34 = vpop.xlane.xlu1 %127  ;;  %v513_v35 = vpop.xlane.xlu0 %129 }
 0x115   :  { %289 = vpow2.f32 %v149_v33  ;;  %v142_v36 = vsub.f32 %v469_v9, %v511_v34  ;;  %v143_v37 = vsub.f32 %v471_v10, %v513_v35 }
 0x117   :  { %v151_v38 = vmul.f32 1.442695, %v142_v36  ;;  %v153_v41 = vmul.f32 1.442695, %v143_v37 }
 0x118   :  { %v519_v42 = vpop.xlane.xlu1 %133  ;;  %v521_v43 = vpop.xlane.xlu0 %131 }
 0x119   :  { %291 = vpow2.f32 %v151_v38  ;;  %v145_v44 = vsub.f32 %v494_v24, %v519_v42  ;;  %v144_v45 = vsub.f32 %v491_v21, %v521_v43 }
 0x11a   :  { %293 = vpow2.f32 %v153_v41 }
 0x11b   :  { %v157_v46 = vmul.f32 1.442695, %v145_v44  ;;  %v155_v47 = vmul.f32 1.442695, %v144_v45 }
 0x11c   :  { %v527_v48 = vpop.xlane.xlu1 %137  ;;  %v529_v49 = vpop.xlane.xlu0 %135 }
 0x11d   :  { %295 = vpow2.f32 %v157_v46  ;;  %v147_v50 = vsub.f32 %v498_v27, %v527_v48  ;;  %v146_v51 = vsub.f32 %v500_v28, %v529_v49 }
 0x11e   :  { %297 = vpow2.f32 %v155_v47 }
 0x11f   :  { %v161_v52 = vmul.f32 1.442695, %v147_v50  ;;  %v159_v53 = vmul.f32 1.442695, %v146_v51 }
 0x120   :  { %v535_v57 = vpop.xlane.xlu0 %139 }
 0x121   :  { %299 = vpow2.f32 %v161_v52  ;;  %v148_v58 = vsub.f32 %v504_v30, %v535_v57 }
 0x122   :  { %v290_v59 = vpop.eup %289  ;;  %301 = vpow2.f32 %v159_v53 }
 0x123   :  { %v163_v60 = vmul.f32 1.442695, %v148_v58  ;;  %165 = vadd.xlane.f32.xlu1 %v290_v59 }
 0x125   :  { %303 = vpow2.f32 %v163_v60 }
 0x126   :  { %v292_v61 = vpop.eup %291 }
 0x127   :  { %v294_v62 = vpop.eup %293  ;;  %167 = vadd.xlane.f32.xlu0 %v292_v61 }
 0x128   :  { %169 = vadd.xlane.f32.xlu1 %v294_v62 }
 0x12a   :  { %v296_v63 = vpop.eup %295 }
 0x12b   :  { %v298_v0 = vpop.eup %297 }
 0x12c   :  { %173 = vadd.xlane.f32.xlu1 %v296_v63  ;;  %171 = vadd.xlane.f32.xlu0 %v298_v0 }
 0x12e   :  { %v300_v1 = vpop.eup %299 }
 0x12f   :  { %v302_v2 = vpop.eup %301 }
 0x130   :  { %177 = vadd.xlane.f32.xlu1 %v300_v1  ;;  %175 = vadd.xlane.f32.xlu0 %v302_v2 }
 0x132   :  { %v304_v3 = vpop.eup %303 }
 0x134   :  { %179 = vadd.xlane.f32.xlu0 %v304_v3  ;;  %213 = vadd.xlane.f32.xlu1 %v205_v4 }
 0x138   :  { %215 = vadd.xlane.f32.xlu0 %v206_v5  ;;  %217 = vadd.xlane.f32.xlu1 %v207_v6 }
 0x13c   :  { %219 = vadd.xlane.f32.xlu0 %v208_v20  ;;  %221 = vadd.xlane.f32.xlu1 %v209_v56 }
 0x140   :  { %223 = vadd.xlane.f32.xlu0 %v210_v19  ;;  %225 = vadd.xlane.f32.xlu1 %v211_v40 }
 0x144   :  { %227 = vadd.xlane.f32.xlu0 %v212_v39 }
 0x1ac   :  { %v166_v55 = vpop.xlane.xlu1 %165 }
 0x1ad   :  { %305 = vlog2.f32 %v166_v55 }
 0x1b0   :  { %v168_v9 = vpop.xlane.xlu0 %167 }
 0x1b1   :  { %v170_v10 = vpop.xlane.xlu1 %169  ;;  %307 = vlog2.f32 %v168_v9 }
 0x1b2   :  { %309 = vlog2.f32 %v170_v10 }
 0x1b5   :  { %v174_v54 = vpop.xlane.xlu1 %173  ;;  %v172_v11 = vpop.xlane.xlu0 %171 }
 0x1b6   :  { %311 = vlog2.f32 %v174_v54 }
 0x1b7   :  { %313 = vlog2.f32 %v172_v11 }
 0x1b9   :  { %v178_v8 = vpop.xlane.xlu1 %177  ;;  %v176_v13 = vpop.xlane.xlu0 %175 }
 0x1ba   :  { %v306_v14 = vpop.eup %305  ;;  %315 = vlog2.f32 %v178_v8 }
 0x1bb   :  { %v182_v15 = vmul.f32 0.6931472, %v306_v14  ;;  %317 = vlog2.f32 %v176_v13 }
 0x1bd   :  { %v180_v16 = vpop.xlane.xlu0 %179  ;;  %v197_v12 = vadd.f32 %v182_v15, %v507_v31  ;;  %v214_v7 = vpop.xlane.xlu1 %213 }
 0x1be   :  { %v308_v17 = vpop.eup %307  ;;  %319 = vlog2.f32 %v180_v16 }
 0x1bf   :  { %v310_v18 = vpop.eup %309  ;;  %v184_v21 = vmul.f32 0.6931472, %v308_v17  ;;  %v256_v22 = vsub.f32 %v197_v12, %v214_v7 }
 0x1c0   :  { %v186_v23 = vmul.f32 0.6931472, %v310_v18 }
 0x1c1   :  { %273 = vst.msk [vmem:[%s613_s2] sm:$0xff] %vm272_vm8, %v256_v22  ;;  %v198_v24 = vadd.f32 %v184_v21, %v511_v34  ;;  %v216_v25 = vpop.xlane.xlu0 %215  ;;  %v218_v26 = vpop.xlane.xlu1 %217 }
 0x1c2   :  { %v199_v27 = vadd.f32 %v186_v23, %v513_v35 }
 0x1c3   :  { %v312_v28 = vpop.eup %311  ;;  %v257_v29 = vsub.f32 %v198_v24, %v216_v25 }
 0x1c4   :  { %v314_v30 = vpop.eup %313  ;;  %v190_v31 = vmul.f32 0.6931472, %v312_v28  ;;  %v258_v32 = vsub.f32 %v199_v27, %v218_v26 }
 0x1c5   :  { %v188_v33 = vmul.f32 0.6931472, %v314_v30  ;;  %274 = vst.msk [vmem:[%s613_s2 + $0x8] sm:$0xff] %vm272_vm8, %v257_v29  ;;  %v220_v36 = vpop.xlane.xlu0 %219  ;;  %v222_v37 = vpop.xlane.xlu1 %221 }
 0x1c6   :  { %275 = vst.msk [vmem:[%s613_s2 + $0x10] sm:$0xff] %vm272_vm8, %v258_v32  ;;  %v201_v34 = vadd.f32 %v190_v31, %v519_v42 }
 0x1c7   :  { %v316_v35 = vpop.eup %315  ;;  %v200_v38 = vadd.f32 %v188_v33, %v521_v43 }
 0x1c8   :  { %v318_v41 = vpop.eup %317  ;;  %v194_v44 = vmul.f32 0.6931472, %v316_v35  ;;  %v260_v45 = vsub.f32 %v201_v34, %v222_v37 }
 0x1c9   :  { %v192_v46 = vmul.f32 0.6931472, %v318_v41  ;;  %v259_v47 = vsub.f32 %v200_v38, %v220_v36  ;;  %v224_v50 = vpop.xlane.xlu0 %223  ;;  %v226_v43 = vpop.xlane.xlu1 %225 }
 0x1ca   :  { %277 = vst.msk [vmem:[%s613_s2 + $0x20] sm:$0xff] %vm272_vm8, %v260_v45  ;;  %v203_v51 = vadd.f32 %v194_v44, %v527_v48 }
 0x1cb   :  { %v320_v52 = vpop.eup %319  ;;  %276 = vst.msk [vmem:[%s613_s2 + $0x18] sm:$0xff] %vm272_vm8, %v259_v47  ;;  %v202_v42 = vadd.f32 %v192_v46, %v529_v49 }
 0x1cc   :  { %v196_v53 = vmul.f32 0.6931472, %v320_v52  ;;  %v262_v58 = vsub.f32 %v203_v51, %v226_v43 }
 0x1cd   :  { %v261_v59 = vsub.f32 %v202_v42, %v224_v50  ;;  %v228_v48 = vpop.xlane.xlu0 %227 }
 0x1ce   :  { %279 = vst.msk [vmem:[%s613_s2 + $0x30] sm:$0xff] %vm272_vm8, %v262_v58  ;;  %v204_v60 = vadd.f32 %v196_v53, %v535_v57 }
 0x1cf   :  { %278 = vst.msk [vmem:[%s613_s2 + $0x28] sm:$0xff] %vm272_vm8, %v261_v59 }
 0x1d0   :  { %v263_v61 = vsub.f32 %v204_v60, %v228_v48 }
 0x1d2   :  { %280 = vst.msk [vmem:[%s613_s2 + $0x38] sm:$0xff] %vm272_vm8, %v263_v61 }

</bundles_post_ra>
